<compile_context>
chip_gen: v5e
topology: v5e:2x2
jax: 0.10.0
libtpu: 0.0.40
codegen_flags: <defaults>
</compile_context>

<pallas_src>
import functools

import jax
import jax.numpy as jnp
from jax import lax
from jax.experimental import pallas as pl
from jax.experimental.pallas import tpu as pltpu

LANE = 128
MAX_BLOCK_ROWS = 4096              # 4096 x 128 f32 = 2 MiB per input block
VMEM_LIMIT_BYTES = 32 * 1024 * 1024


def _min_sublane(dtype) -> int:
    # f32 -> 8, bf16/f16 -> 16, int8/fp8 -> 32 (sub-32-bit packs along sublanes)
    return max(8, 32 // jnp.dtype(dtype).itemsize)


def _smooth_l1_kernel(o_ref, t_ref, sum_ref, cnt_ref, *,
                      beta, rows, block_rows, ragged_rows):
    i = pl.program_id(0)

    @pl.when(i == 0)
    def _():
        sum_ref[...] = jnp.zeros_like(sum_ref)
        cnt_ref[...] = jnp.zeros_like(cnt_ref)

    # Cast in-vreg (wrapper never casts -> no extra HBM traffic for bf16 etc.)
    o = o_ref[...].astype(jnp.float32)
    t = t_ref[...].astype(jnp.float32)

    half_over_beta = 0.5 / beta    # Python constants: multiply, never divide
    half_beta = 0.5 * beta
    n = jnp.abs(o - t)
    loss = jnp.where(n < beta, n * n * half_over_beta, n - half_beta)
    base_mask = t != 0.0           # reference: target != 0 filter

    def accumulate(mask):
        # In-vreg block reduce to an (8, LANE) vreg, then a single vreg add
        # into the resident output accumulators (pure VALU work).
        sum_ref[...] += jnp.sum(
            jnp.where(mask, loss, 0.0).reshape(-1, 8, LANE), axis=0)
        cnt_ref[...] += jnp.sum(
            mask.astype(jnp.float32).reshape(-1, 8, LANE), axis=0)

    if not ragged_rows:
        # rows % block_rows == 0 (static): no boundary masking ever needed.
        accumulate(base_mask)
    else:
        # Only the last grid step reads past `rows`; gate the iota/compare/and
        # so interior blocks do not pay for it.
        is_last = i == pl.num_programs(0) - 1

        @pl.when(jnp.logical_not(is_last))
        def _():
            accumulate(base_mask)

        @pl.when(is_last)
        def _():
            r = lax.broadcasted_iota(jnp.int32, (block_rows, LANE), 0)
            in_range = (i * block_rows + r) < rows
            accumulate(jnp.logical_and(base_mask, in_range))


def _partials_jax(o, t, beta):
    """(sum, count) of the smooth-L1 partial losses over target!=0 elements."""
    o = o.astype(jnp.float32)
    t = t.astype(jnp.float32)
    mask = t != 0.0
    n = jnp.abs(o - t)
    loss = jnp.where(n < beta, (0.5 / beta) * n * n, n - 0.5 * beta)
    return jnp.sum(jnp.where(mask, loss, 0.0)), jnp.sum(mask.astype(jnp.float32))


def smooth_l1_types(output, target, types=None, beta=0.11,
                    max_block_rows=MAX_BLOCK_ROWS):
    """Pallas implementation of SmoothL1Types.forward.

    `types` is unused (dead code in the reference forward).
    """
    del types  # has no effect on the reference result
    beta = float(beta)

    o = output.reshape(-1)
    t = target.reshape(-1)
    n_elems = o.shape[0]

    rows = n_elems // LANE
    rem = n_elems - rows * LANE

    # <128-element ragged tail: tiny plain-JAX partials (no full-array pad).
    if rem:
        tail_sum, tail_cnt = _partials_jax(o[rows * LANE:], t[rows * LANE:], beta)
    else:
        tail_sum = jnp.float32(0.0)
        tail_cnt = jnp.float32(0.0)

    if rows == 0:
        total_sum, total_cnt = tail_sum, tail_cnt
    else:
        if rem:
            # TODO(synk): XLA may still materialize this lane-aligned prefix
            # slice; a fully copy-free ragged path would need input fusion.
            o_main = lax.slice(o, (0,), (rows * LANE,))
            t_main = lax.slice(t, (0,), (rows * LANE,))
        else:
            o_main, t_main = o, t
        o2 = o_main.reshape(rows, LANE)   # free reshape, lane-dense last dim
        t2 = t_main.reshape(rows, LANE)

        sub = max(_min_sublane(o.dtype), _min_sublane(t.dtype))
        block_rows = min(max_block_rows, ((rows + sub - 1) // sub) * sub)
        block_rows = ((block_rows + sub - 1) // sub) * sub   # dtype min tile
        num_blocks = pl.cdiv(rows, block_rows)
        ragged_rows = (rows % block_rows) != 0

        psum, pcnt = pl.pallas_call(
            functools.partial(_smooth_l1_kernel, beta=beta, rows=rows,
                              block_rows=block_rows, ragged_rows=ragged_rows),
            out_shape=(jax.ShapeDtypeStruct((8, LANE), jnp.float32),
                       jax.ShapeDtypeStruct((8, LANE), jnp.float32)),
            grid_spec=pltpu.PrefetchScalarGridSpec(
                num_scalar_prefetch=0,
                grid=(num_blocks,),
                in_specs=[
                    pl.BlockSpec((block_rows, LANE), lambda i: (i, 0)),
                    pl.BlockSpec((block_rows, LANE), lambda i: (i, 0)),
                ],
                # Outputs are the accumulators: same block for every grid step
                # -> resident in VMEM, written back to HBM once at the end.
                out_specs=[
                    pl.BlockSpec((8, LANE), lambda i: (0, 0)),
                    pl.BlockSpec((8, LANE), lambda i: (0, 0)),
                ],
            ),
            compiler_params=pltpu.CompilerParams(
                dimension_semantics=("arbitrary",),
                vmem_limit_bytes=VMEM_LIMIT_BYTES,
            ),
        )(o2, t2)

        total_sum = jnp.sum(psum) + tail_sum
        total_cnt = jnp.sum(pcnt) + tail_cnt

    # Factor 8 from the reference i=1..8 loop.
    total = 8.0 * total_sum / total_cnt
    return total.reshape(1).astype(jnp.float32)


def _reference(output, target, beta=0.11):
    s, c = _partials_jax(output.reshape(-1), target.reshape(-1), beta)
    return (8.0 * s / c).reshape(1).astype(jnp.float32)


if __name__ == "__main__":
    key = jax.random.PRNGKey(0)
    k1, k2, k3, k4 = jax.random.split(key, 4)

    # Primary case: NCHW-like, lane-aligned total size (2*4*16*16 = 2048).
    shape = (2, 4, 16, 16)
    output = jax.random.normal(k1, shape, dtype=jnp.float32)
    target = jax.random.normal(k2, shape, dtype=jnp.float32)
    drop = jax.random.bernoulli(k3, p=0.3, shape=shape)
    target = jnp.where(drop, 0.0, target)
    types = jax.random.randint(k4, shape, 0, 9, dtype=jnp.int32)  # unused by fwd

    got = jax.block_until_ready(smooth_l1_types(output, target, types, beta=0.11))
    want = _reference(output, target, beta=0.11)
    assert got.shape == (1,) and got.dtype == jnp.float32
    assert jnp.allclose(got, want, rtol=1e-5, atol=1e-5), (got, want)

    # Ragged case: 2*4*5*55 = 2200 (not lane-aligned) with a small block cap to
    # exercise multi-block tiling, the pl.when boundary-mask path and the
    # plain-JAX tail reduction.
    shape2 = (2, 4, 5, 55)
    out2 = jax.random.normal(k1, shape2, dtype=jnp.float32)
    tgt2 = jax.random.normal(k2, shape2, dtype=jnp.float32)
    tgt2 = jnp.where(jax.random.bernoulli(k3, p=0.25, shape=shape2), 0.0, tgt2)
    got2 = jax.block_until_ready(
        smooth_l1_types(out2, tgt2, None, beta=0.11, max_block_rows=8))
    want2 = _reference(out2, tgt2, beta=0.11)
    assert jnp.allclose(got2, want2, rtol=1e-5, atol=1e-5), (got2, want2)

    # bf16 case: exercises the 16-sublane min-tile rounding and in-vreg cast.
    out3 = output.astype(jnp.bfloat16)
    tgt3 = target.astype(jnp.bfloat16)
    got3 = jax.block_until_ready(smooth_l1_types(out3, tgt3, types, beta=0.11))
    want3 = _reference(out3, tgt3, beta=0.11)
    assert jnp.allclose(got3, want3, rtol=1e-4, atol=1e-4), (got3, want3)

    print("KERNEL_OK")
</pallas_src>

<mosaic_0001>
module attributes {stable_mosaic.version = 11 : i64} {
  func.func @_smooth_l1_kernel(%arg0: i32, %arg1: memref<16x128xf32, #tpu.memory_space<vmem>>, %arg2: memref<16x128xf32, #tpu.memory_space<vmem>>, %arg3: memref<8x128xf32, #tpu.memory_space<vmem>>, %arg4: memref<8x128xf32, #tpu.memory_space<vmem>>) attributes {dimension_semantics = [#tpu.dimension_semantics<arbitrary>], iteration_bounds = array<i64: 1>, scalar_prefetch = 0 : i64, scratch_operands = 0 : i64, tpu.core_type = #tpu.core_type<tc>, window_params = [{transform_indices = @transform_0, window_bounds = array<i64: 16, 128>}, {transform_indices = @transform_1, window_bounds = array<i64: 16, 128>}, {pipeline_mode = #tpu.pipeline_mode<synchronous>, transform_indices = @transform_2, window_bounds = array<i64: 8, 128>}, {pipeline_mode = #tpu.pipeline_mode<synchronous>, transform_indices = @transform_3, window_bounds = array<i64: 8, 128>}]} {
    %c0_i32 = arith.constant 0 : i32
    %0 = arith.cmpi eq, %arg0, %c0_i32 : i32
    %1 = arith.extui %0 : i1 to i32
    %c0_i32_0 = arith.constant 0 : i32
    %2 = arith.cmpi ne, %1, %c0_i32_0 : i32
    scf.if %2 {
      %cst_18 = arith.constant 0.000000e+00 : f32
      %31 = vector.broadcast %cst_18 : f32 to vector<8x128xf32>
      %c0_19 = arith.constant 0 : index
      %c0_20 = arith.constant 0 : index
      %32 = vector.load %arg3[%c0_19, %c0_20] : memref<8x128xf32, #tpu.memory_space<vmem>>, vector<8x128xf32>
      tpu.vector_store %arg3[%c0_19, %c0_20], %31 {strides = array<i32>} : memref<8x128xf32, #tpu.memory_space<vmem>>, vector<8x128xf32>,
      %cst_21 = arith.constant 0.000000e+00 : f32
      %33 = vector.broadcast %cst_21 : f32 to vector<8x128xf32>
      %c0_22 = arith.constant 0 : index
      %c0_23 = arith.constant 0 : index
      %34 = vector.load %arg4[%c0_22, %c0_23] : memref<8x128xf32, #tpu.memory_space<vmem>>, vector<8x128xf32>
      tpu.vector_store %arg4[%c0_22, %c0_23], %33 {strides = array<i32>} : memref<8x128xf32, #tpu.memory_space<vmem>>, vector<8x128xf32>,
    } else {
    }
    %c0 = arith.constant 0 : index
    %c0_1 = arith.constant 0 : index
    %3 = vector.load %arg1[%c0, %c0_1] : memref<16x128xf32, #tpu.memory_space<vmem>>, vector<16x128xf32>
    %c0_2 = arith.constant 0 : index
    %c0_3 = arith.constant 0 : index
    %4 = vector.load %arg2[%c0_2, %c0_3] : memref<16x128xf32, #tpu.memory_space<vmem>>, vector<16x128xf32>
    %5 = arith.subf %3, %4 : vector<16x128xf32>
    %6 = math.absf %5 : vector<16x128xf32>
    %cst = arith.constant 1.100000e-01 : f32
    %7 = vector.broadcast %cst : f32 to vector<16x128xf32>
    %8 = arith.cmpf olt, %6, %7 : vector<16x128xf32>
    %9 = arith.mulf %6, %6 : vector<16x128xf32>
    %cst_4 = arith.constant 4.5454545 : f32
    %10 = vector.broadcast %cst_4 : f32 to vector<16x128xf32>
    %11 = arith.mulf %9, %10 : vector<16x128xf32>
    %cst_5 = arith.constant 5.500000e-02 : f32
    %12 = vector.broadcast %cst_5 : f32 to vector<16x128xf32>
    %13 = arith.subf %6, %12 : vector<16x128xf32>
    %14 = arith.select %8, %11, %13 : vector<16x128xi1>, vector<16x128xf32>
    %cst_6 = arith.constant 0.000000e+00 : f32
    %15 = vector.broadcast %cst_6 : f32 to vector<16x128xf32>
    %16 = arith.cmpf one, %4, %15 : vector<16x128xf32>
    %c0_7 = arith.constant 0 : index
    %c0_8 = arith.constant 0 : index
    %17 = vector.load %arg3[%c0_7, %c0_8] : memref<8x128xf32, #tpu.memory_space<vmem>>, vector<8x128xf32>
    %cst_9 = arith.constant 0.000000e+00 : f32
    %18 = vector.broadcast %cst_9 : f32 to vector<16x128xf32>
    %19 = arith.select %16, %14, %18 : vector<16x128xi1>, vector<16x128xf32>
    %20 = vector.shape_cast %19 : vector<16x128xf32> to vector<2x8x128xf32>
    %cst_10 = arith.constant dense<0.000000e+00> : vector<8x128xf32>
    %21 = vector.multi_reduction <add>, %20, %cst_10 [0] : vector<2x8x128xf32> to vector<8x128xf32>
    %22 = arith.addf %17, %21 : vector<8x128xf32>
    %c0_11 = arith.constant 0 : index
    %c0_12 = arith.constant 0 : index
    %23 = vector.load %arg3[%c0_11, %c0_12] : memref<8x128xf32, #tpu.memory_space<vmem>>, vector<8x128xf32>
    tpu.vector_store %arg3[%c0_11, %c0_12], %22 {strides = array<i32>} : memref<8x128xf32, #tpu.memory_space<vmem>>, vector<8x128xf32>,
    %c0_13 = arith.constant 0 : index
    %c0_14 = arith.constant 0 : index
    %24 = vector.load %arg4[%c0_13, %c0_14] : memref<8x128xf32, #tpu.memory_space<vmem>>, vector<8x128xf32>
    %25 = arith.extui %16 : vector<16x128xi1> to vector<16x128xi32>
    %26 = arith.sitofp %25 : vector<16x128xi32> to vector<16x128xf32>
    %27 = vector.shape_cast %26 : vector<16x128xf32> to vector<2x8x128xf32>
    %cst_15 = arith.constant dense<0.000000e+00> : vector<8x128xf32>
    %28 = vector.multi_reduction <add>, %27, %cst_15 [0] : vector<2x8x128xf32> to vector<8x128xf32>
    %29 = arith.addf %24, %28 : vector<8x128xf32>
    %c0_16 = arith.constant 0 : index
    %c0_17 = arith.constant 0 : index
    %30 = vector.load %arg4[%c0_16, %c0_17] : memref<8x128xf32, #tpu.memory_space<vmem>>, vector<8x128xf32>
    tpu.vector_store %arg4[%c0_16, %c0_17], %29 {strides = array<i32>} : memref<8x128xf32, #tpu.memory_space<vmem>>, vector<8x128xf32>,
    return
  }
  func.func @transform_0(%arg0: i32) -> (i32, i32) {
    %c0_i32 = arith.constant 0 : i32
    %c0_i32_0 = arith.constant 0 : i32
    return %arg0, %c0_i32 : i32, i32
  }
  func.func @transform_1(%arg0: i32) -> (i32, i32) {
    %c0_i32 = arith.constant 0 : i32
    %c0_i32_0 = arith.constant 0 : i32
    return %arg0, %c0_i32 : i32, i32
  }
  func.func @transform_2(%arg0: i32) -> (i32, i32) {
    %c0_i32 = arith.constant 0 : i32
    %c0_i32_0 = arith.constant 0 : i32
    %c0_i32_1 = arith.constant 0 : i32
    return %c0_i32, %c0_i32_0 : i32, i32
  }
  func.func @transform_3(%arg0: i32) -> (i32, i32) {
    %c0_i32 = arith.constant 0 : i32
    %c0_i32_0 = arith.constant 0 : i32
    %c0_i32_1 = arith.constant 0 : i32
    return %c0_i32, %c0_i32_0 : i32, i32
  }
}

</mosaic_0001>

<bundles_post_ra>
// kernel: tpu_custom_call.1
= control target key start
LH: loop header
LB: loop body
LE: loop exit
PB: predicated region body
PF: predicated region fallthrough
CT: control target
= control target key end

     0   :  { %9 = vsyncpa [#allocation3], 0  ;;  %s279_s0 = inlined_call_operand.hbm [shape: f32[16,128], index: 0, kind: input, shape index: {}]   ;;  %s280_s1 = inlined_call_operand.hbm [shape: f32[16,128], index: 1, kind: input, shape index: {}]   ;;  %s281_s2 = inlined_call_operand.hbm [shape: f32[8,128], index: 2, kind: output, shape index: {0}]   ;;  %s282_s3 = inlined_call_operand.hbm [shape: f32[8,128], index: 3, kind: output, shape index: {1}]  }
   0x1   :  { %10 = vsyncpa [#allocation6], 0 }
   0x2   :  { %11 = vsyncpa [#allocation4], 0 }
   0x3   :  { %12 = vsyncpa [#allocation9], 0  ;;  %s17_s14 = sshll.u32 %s279_s0, 4  ;;  %s236_s15 = smov [#allocation2]   ;;  %s18_s14 = int_to_ptr.hbm [resolvable:$true] %s17_s14 }
   0x4   :  { %s19_s16 = sshll.u32 %s236_s15, 4  ;;  %s30_s19 = sshll.u32 %s280_s1, 4  ;;  %s20_s16 = int_to_ptr.vmem [resolvable:$true] %s19_s16  ;;  %s31_s19 = int_to_ptr.hbm [resolvable:$true] %s30_s19 }
   0x5   :  { %s237_s20 = smov 128   ;;  %s238_s21 = smov 8  }
   0x6   :  { %25 = dma.hbm_to_vmem [thread:$0]  %s18_s14, 256, %s20_s16, [#allocation3], %s237_s20, %s237_s20, %s238_s21  }
   0x7   :  { %s239_s22 = smov [#allocation5]  }
   0x8   :  { %s32_s23 = sshll.u32 %s239_s22, 4  ;;  %s33_s23 = int_to_ptr.vmem [resolvable:$true] %s32_s23 }
   0x9   :  { %38 = dma.hbm_to_vmem [thread:$0]  %s31_s19, 256, %s33_s23, [#allocation6], %s237_s20, %s237_s20, %s238_s21  }
   0xa   :  { %228 = dma.done.wait [#allocation3], 256  }
   0xb   :  { %229 = vsyncadd [#allocation3], 4294967040 }
   0xc   :  { %230 = dma.done.wait [#allocation6], 256  }
   0xd   :  { %231 = vsyncadd [#allocation6], 4294967040  ;;  %v53_v0 = vld [vmem:[#allocation2] sm:$0xff]  ;;  %v54_v1 = vld [vmem:[#allocation2 + $0x8] sm:$0xff]  ;;  %v240_v6 = vmov 0.0   ;;  %s241_s0 = smov [#allocation8]  }
   0xe   :  { %v55_v2 = vld [vmem:[#allocation5] sm:$0xff]  ;;  %v56_v3 = vld [vmem:[#allocation5 + $0x8] sm:$0xff]  ;;  %s103_s1 = sshll.u32 %s241_s0, 4  ;;  %s105_s26 = sshll.u32 %s282_s3, 4  ;;  %s104_s1 = int_to_ptr.vmem [resolvable:$true] %s103_s1  ;;  %s106_s26 = int_to_ptr.hbm [resolvable:$true] %s105_s26 }
   0xf   :  { %v57_v4 = vsub.f32 %v53_v0, %v55_v2  ;;  %vm71_vm0 = vcmp.ne.f32.partialorder %v55_v2, 0.0  ;;  %v58_v5 = vsub.f32 %v54_v1, %v56_v3  ;;  %vm72_vm1 = vcmp.ne.f32.partialorder %v56_v3, 0.0  ;;  %s242_s3 = smov [#allocation7]   ;;  %s94_s30 = sshll.u32 %s281_s2, 4  ;;  %s95_s30 = int_to_ptr.hbm [resolvable:$true] %s94_s30 }
  0x10   :  { %v123_v7 = vsel %vm71_vm0, 1.0, %v240_v6  ;;  %v124_v9 = vsel %vm72_vm1, 1.0, %v240_v6  ;;  %s92_s27 = sshll.u32 %s242_s3, 4  ;;  %s93_s27 = int_to_ptr.vmem [resolvable:$true] %s92_s27 }
  0x11   :  { %v59_v8 = vand.u32 2147483647, %v57_v4  ;;  %v60_v10 = vand.u32 2147483647, %v58_v5  ;;  %v84_v11 = vadd.f32 %v124_v9, %v123_v7 }
  0x13   :  { %v63_v12 = vmul.f32 %v59_v8, %v59_v8  ;;  %v121_v13 = vadd.f32 -0.055, %v59_v8  ;;  %vm61_vm2 = vcmp.lt.f32.partialorder %v59_v8, 0.11  ;;  %v64_v14 = vmul.f32 %v60_v10, %v60_v10  ;;  %86 = vst [vmem:[#allocation8] sm:$0xff] %v84_v11 }
  0x14   :  { %v122_v15 = vadd.f32 -0.055, %v60_v10  ;;  %vm62_vm3 = vcmp.lt.f32.partialorder %v60_v10, 0.11  ;;  %108 = dma.vmem_to_hbm [thread:$0]  %s104_s1, 128, %s106_s26, [#allocation9]  }
  0x15   :  { %v65_v16 = vmul.f32 4.5454545, %v63_v12  ;;  %v66_v17 = vmul.f32 4.5454545, %v64_v14 }
  0x17   :  { %v69_v18 = vsel %vm61_vm2, %v65_v16, %v121_v13  ;;  %v70_v19 = vsel %vm62_vm3, %v66_v17, %v122_v15 }
  0x18   :  { %v74_v20 = vsel %vm71_vm0, %v69_v18, 0.0  ;;  %v75_v21 = vsel %vm72_vm1, %v70_v19, 0.0 }
  0x19   :  { %v76_v22 = vadd.f32 %v75_v21, %v74_v20 }
  0x1b   :  { %78 = vst [vmem:[#allocation7] sm:$0xff] %v76_v22 }
  0x1c   :  { %97 = dma.vmem_to_hbm [thread:$0]  %s93_s27, 128, %s95_s30, [#allocation4]  }
  0x1d   :  { %232 = dma.done.wait [#allocation4], 128  }
  0x1e   :  { %233 = vsyncadd [#allocation4], 4294967168 }
  0x1f   :  { %234 = dma.done.wait [#allocation9], 128  }
  0x20   :  { %235 = vsyncadd [#allocation9], 4294967168 }
  0x21   :  { %117 = vsyncpa [#allocation3], 1 }
  0x22   :  { %118 = vsyncpa [#allocation6], 1 }
  0x23   :  { %119 = vsyncpa [#allocation4], 1 }
  0x24   :  { %120 = vsyncpa [#allocation9], 1 }

</bundles_post_ra>
